<compile_context>
chip_gen: v7x
topology: tpu7x:2x2x1
jax: 0.10.0
libtpu: 0.0.40
codegen_flags: <defaults>
</compile_context>

<pallas_src>
import functools

import jax
import jax.numpy as jnp
from jax.experimental import pallas as pl
from jax.experimental.pallas import tpu as pltpu

LANES = 128
SUBLANES = 8
MAX_BLOCK_ROWS = 4096          # 4096 x 128 x 4 B = 2 MiB per f32 input block
GAMMA = 2                      # matches Focal_Loss(gamma=2); keep as Python int


def _focal_terms(p, t, gamma):
    """Elementwise focal loss terms (computed in f32)."""
    return (-((1.0 - p) ** gamma) * t * jnp.log(p)
            - (p ** gamma) * (1.0 - t) * jnp.log(1.0 - p))


def _focal_sum_kernel(p_ref, t_ref, out_ref, *, gamma):
    """Accumulate per-(sublane, lane) partial sums of the focal loss into out_ref.

    out_ref is the (8, 128) f32 output block for this core; it is zeroed on the
    first inner-grid step and accumulated over the "arbitrary" inner axis.
    """
    @pl.when(pl.program_id(1) == 0)
    def _():
        out_ref[...] = jnp.zeros_like(out_ref)

    p = p_ref[...].astype(jnp.float32)
    t = t_ref[...].astype(jnp.float32)
    loss = _focal_terms(p, t, gamma)

    # (block_rows, 128) -> (block_rows//8, 8, 128) exactly respects the (8,128)
    # vreg tiling, so the reshape is free and the axis-0 sum is pure VPU adds.
    out_ref[...] += loss.reshape(-1, SUBLANES, LANES).sum(axis=0)


def focal_loss(inputs, targets, gamma=GAMMA, max_block_rows=MAX_BLOCK_ROWS):
    """Pallas TPU focal loss (mean reduction). inputs/targets: any shape, p in (0,1)."""
    assert inputs.shape == targets.shape
    n = inputs.size

    p_flat = jnp.ravel(inputs)
    t_flat = jnp.ravel(targets)

    rows_valid = n // LANES                               # fully-valid lane rows
    block_rows = min(max_block_rows,
                     max(SUBLANES, (rows_valid // SUBLANES) * SUBLANES))
    full_blocks = rows_valid // block_rows
    n_outer = 2 if full_blocks >= 2 else 1                # v7x megacore split
    n_inner = full_blocks // n_outer
    covered_rows = n_outer * n_inner * block_rows         # rows handled by kernel

    kernel_sum = jnp.float32(0.0)
    if n_inner > 0:
        # Build the lane-dense 2-D view. Pad (one copy) only when the flat size
        # is not lane-aligned; the padded row is never read by the kernel.
        n_pad = (-n) % LANES
        if n_pad:
            p2 = jnp.pad(p_flat, (0, n_pad), constant_values=0.5)
            t2 = jnp.pad(t_flat, (0, n_pad))
        else:
            p2, t2 = p_flat, t_flat
        rows_total = (n + n_pad) // LANES
        p2 = p2.reshape(rows_total, LANES)
        t2 = t2.reshape(rows_total, LANES)

        in_spec = pl.BlockSpec((block_rows, LANES),
                               lambda o, i: (o * n_inner + i, 0))
        out_spec = pl.BlockSpec((None, SUBLANES, LANES), lambda o, i: (o, 0, 0))

        partials = pl.pallas_call(
            functools.partial(_focal_sum_kernel, gamma=gamma),
            out_shape=jax.ShapeDtypeStruct((n_outer, SUBLANES, LANES),
                                           jnp.float32),
            grid_spec=pltpu.PrefetchScalarGridSpec(
                num_scalar_prefetch=0,
                grid=(n_outer, n_inner),
                in_specs=[in_spec, in_spec],
                out_specs=out_spec,
            ),
            compiler_params=pltpu.CompilerParams(
                dimension_semantics=("parallel", "arbitrary"),
            ),
        )(p2, t2)
        kernel_sum = jnp.sum(partials)

    # Ragged tail (uncovered rows + lane remainder): < 2 blocks of elements,
    # summed by a tiny fused XLA epilogue on the *unpadded* flat arrays.
    tail_start = covered_rows * LANES
    if tail_start < n:
        pt = p_flat[tail_start:].astype(jnp.float32)
        tt = t_flat[tail_start:].astype(jnp.float32)
        tail_sum = jnp.sum(_focal_terms(pt, tt, gamma))
    else:
        tail_sum = jnp.float32(0.0)

    return (kernel_sum + tail_sum) * jnp.float32(1.0 / n)


def focal_loss_ref(inputs, targets, gamma=GAMMA):
    p = inputs.astype(jnp.float32)
    t = targets.astype(jnp.float32)
    return jnp.mean(_focal_terms(p, t, gamma))


if __name__ == "__main__":
    key = jax.random.PRNGKey(0)

    # (shape, max_block_rows): exercise single-block, lane-pad + XLA tail, and
    # the 2-way parallel split respectively.  All shapes kept small.
    tests = [
        ((2, 4, 16, 16), MAX_BLOCK_ROWS),   # 2048 elems, lane-aligned, 1 block
        ((3, 5, 7, 11), MAX_BLOCK_ROWS),    # 1155 elems, lane pad + tail
        ((2, 4, 16, 18), 8),                # 2304 elems, 2-way split + tail
    ]

    for shape, mbr in tests:
        key, k1, k2 = jax.random.split(key, 3)
        # inputs are probabilities in (0, 1); keep away from 0/1 for finite log
        inputs = jax.random.uniform(k1, shape, jnp.float32,
                                    minval=1e-3, maxval=1.0 - 1e-3)
        targets = jax.random.bernoulli(k2, 0.5, shape).astype(jnp.float32)

        out = focal_loss(inputs, targets, max_block_rows=mbr)
        out = jax.block_until_ready(out)

        ref = focal_loss_ref(inputs, targets)
        assert jnp.allclose(out, ref, rtol=1e-4, atol=1e-6), (shape, out, ref)

    print("KERNEL_OK")
</pallas_src>

<mosaic_0001>
module attributes {stable_mosaic.version = 11 : i64} {
  func.func @_focal_sum_kernel(%arg0: i32, %arg1: i32, %arg2: memref<16x128xf32, #tpu.memory_space<vmem>>, %arg3: memref<16x128xf32, #tpu.memory_space<vmem>>, %arg4: memref<1x8x128xf32, #tpu.memory_space<vmem>>) attributes {dimension_semantics = [#tpu.dimension_semantics<parallel>, #tpu.dimension_semantics<arbitrary>], iteration_bounds = array<i64: 1, 1>, scalar_prefetch = 0 : i64, scratch_operands = 0 : i64, tpu.core_type = #tpu.core_type<tc>, window_params = [{transform_indices = @transform_0, window_bounds = array<i64: 16, 128>}, {transform_indices = @transform_1, window_bounds = array<i64: 16, 128>}, {transform_indices = @transform_2, window_bounds = array<i64: 1, 8, 128>}]} {
    %c0_i32 = arith.constant 0 : i32
    %0 = arith.cmpi eq, %arg1, %c0_i32 : i32
    %1 = arith.extui %0 : i1 to i32
    %c0_i32_0 = arith.constant 0 : i32
    %2 = arith.cmpi ne, %1, %c0_i32_0 : i32
    scf.if %2 {
      %cst_14 = arith.constant 0.000000e+00 : f32
      %30 = vector.broadcast %cst_14 : f32 to vector<8x128xf32>
      %c0_15 = arith.constant 0 : index
      %c0_16 = arith.constant 0 : index
      %c0_17 = arith.constant 0 : index
      %31 = vector.load %arg4[%c0_15, %c0_16, %c0_17] : memref<1x8x128xf32, #tpu.memory_space<vmem>>, vector<1x8x128xf32>
      %32 = vector.shape_cast %31 : vector<1x8x128xf32> to vector<8x128xf32>
      %33 = vector.shape_cast %30 : vector<8x128xf32> to vector<1x8x128xf32>
      tpu.vector_store %arg4[%c0_15, %c0_16, %c0_17], %33 {strides = array<i32>} : memref<1x8x128xf32, #tpu.memory_space<vmem>>, vector<1x8x128xf32>,
    } else {
    }
    %c0 = arith.constant 0 : index
    %c0_1 = arith.constant 0 : index
    %3 = vector.load %arg2[%c0, %c0_1] : memref<16x128xf32, #tpu.memory_space<vmem>>, vector<16x128xf32>
    %c0_2 = arith.constant 0 : index
    %c0_3 = arith.constant 0 : index
    %4 = vector.load %arg3[%c0_2, %c0_3] : memref<16x128xf32, #tpu.memory_space<vmem>>, vector<16x128xf32>
    %cst = arith.constant 1.000000e+00 : f32
    %5 = vector.broadcast %cst : f32 to vector<16x128xf32>
    %6 = arith.subf %5, %3 : vector<16x128xf32>
    %7 = arith.mulf %6, %6 : vector<16x128xf32>
    %cst_4 = arith.constant 0.000000e+00 : f32
    %8 = vector.broadcast %cst_4 : f32 to vector<16x128xf32>
    %9 = arith.subf %8, %7 : vector<16x128xf32>
    %10 = arith.mulf %9, %4 : vector<16x128xf32>
    %11 = math.log %3 : vector<16x128xf32>
    %12 = arith.mulf %10, %11 : vector<16x128xf32>
    %13 = arith.mulf %3, %3 : vector<16x128xf32>
    %cst_5 = arith.constant 1.000000e+00 : f32
    %14 = vector.broadcast %cst_5 : f32 to vector<16x128xf32>
    %15 = arith.subf %14, %4 : vector<16x128xf32>
    %16 = arith.mulf %13, %15 : vector<16x128xf32>
    %cst_6 = arith.constant 1.000000e+00 : f32
    %17 = vector.broadcast %cst_6 : f32 to vector<16x128xf32>
    %18 = arith.subf %17, %3 : vector<16x128xf32>
    %19 = math.log %18 : vector<16x128xf32>
    %20 = arith.mulf %16, %19 : vector<16x128xf32>
    %21 = arith.subf %12, %20 : vector<16x128xf32>
    %c0_7 = arith.constant 0 : index
    %c0_8 = arith.constant 0 : index
    %c0_9 = arith.constant 0 : index
    %22 = vector.load %arg4[%c0_7, %c0_8, %c0_9] : memref<1x8x128xf32, #tpu.memory_space<vmem>>, vector<1x8x128xf32>
    %23 = vector.shape_cast %22 : vector<1x8x128xf32> to vector<8x128xf32>
    %24 = vector.shape_cast %21 : vector<16x128xf32> to vector<2x8x128xf32>
    %cst_10 = arith.constant dense<0.000000e+00> : vector<8x128xf32>
    %25 = vector.multi_reduction <add>, %24, %cst_10 [0] : vector<2x8x128xf32> to vector<8x128xf32>
    %26 = arith.addf %23, %25 : vector<8x128xf32>
    %c0_11 = arith.constant 0 : index
    %c0_12 = arith.constant 0 : index
    %c0_13 = arith.constant 0 : index
    %27 = vector.load %arg4[%c0_11, %c0_12, %c0_13] : memref<1x8x128xf32, #tpu.memory_space<vmem>>, vector<1x8x128xf32>
    %28 = vector.shape_cast %27 : vector<1x8x128xf32> to vector<8x128xf32>
    %29 = vector.shape_cast %26 : vector<8x128xf32> to vector<1x8x128xf32>
    tpu.vector_store %arg4[%c0_11, %c0_12, %c0_13], %29 {strides = array<i32>} : memref<1x8x128xf32, #tpu.memory_space<vmem>>, vector<1x8x128xf32>,
    return
  }
  func.func @transform_0(%arg0: i32, %arg1: i32) -> (i32, i32) {
    %c1_i32 = arith.constant 1 : i32
    %0 = arith.muli %arg0, %c1_i32 : i32
    %1 = arith.addi %0, %arg1 : i32
    %c0_i32 = arith.constant 0 : i32
    %c0_i32_0 = arith.constant 0 : i32
    return %1, %c0_i32 : i32, i32
  }
  func.func @transform_1(%arg0: i32, %arg1: i32) -> (i32, i32) {
    %c1_i32 = arith.constant 1 : i32
    %0 = arith.muli %arg0, %c1_i32 : i32
    %1 = arith.addi %0, %arg1 : i32
    %c0_i32 = arith.constant 0 : i32
    %c0_i32_0 = arith.constant 0 : i32
    return %1, %c0_i32 : i32, i32
  }
  func.func @transform_2(%arg0: i32, %arg1: i32) -> (i32, i32, i32) {
    %c0_i32 = arith.constant 0 : i32
    %c0_i32_0 = arith.constant 0 : i32
    %c0_i32_1 = arith.constant 0 : i32
    return %arg0, %c0_i32, %c0_i32_0 : i32, i32, i32
  }
}

</mosaic_0001>

<bundles_post_ra>
// kernel: tpu_custom_call.1
= control target key start
LH: loop header
LB: loop body
LE: loop exit
PB: predicated region body
PF: predicated region fallthrough
CT: control target
= control target key end

     0   :  { %7 = vsyncpa [#allocation3], 0  ;;  %s251_s0 = inlined_call_operand.hbm [shape: f32[16,128], index: 0, kind: input, shape index: {}]   ;;  %s252_s1 = inlined_call_operand.hbm [shape: f32[16,128], index: 1, kind: input, shape index: {}]   ;;  %s253_s2 = inlined_call_operand.hbm [shape: f32[1,8,128], index: 2, kind: output, shape index: {}]  }
   0x1   :  { %8 = vsyncpa [#allocation6], 0 }
   0x2   :  { %9 = vsyncpa [#allocation4], 0  ;;  %s195_s9 = smov [#allocation2]   ;;  %s123_s13 = scalar_lea.hbm %s251_s0, 256 }
   0x3   :  { %s19_s10 = sshll.u32 %s195_s9, 4  ;;  %p124_p0 = scmp.ne.s32.totalorder %s251_s0, %s123_s13  ;;  %s20_s10 = int_to_ptr.vmem [resolvable:$true] %s19_s10 }
   0x4   :  { %p127_p1 = scmp.lt.u32.totalorder %s123_s13, %s251_s0 }
   0x6   :  { %p129_p2 = pnand %p127_p1, %p124_p0 }
   0x8   :  { %132 = shalt.err (!%p129_p2)
}
   0x9   :  { %s133_s18 = scalar_lea.vmem %s20_s10, 256  ;;  %p138_p4 = scmp.lt.s32.totalorder %s20_s10, %s20_s10 }
   0xa   :  { %p134_p3 = scmp.ne.s32.totalorder %s20_s10, %s133_s18  ;;  %p139_p5 = scmp.lt.s32.totalorder %s133_s18, %s133_s18 }
   0xc   :  { %p140_p6 = por %p139_p5, %p138_p4 }
   0xe   :  { %p141_p7 = pnand %p140_p6, %p134_p3 }
  0x10   :  { %144 = shalt.err (!%p141_p7)
}
  0x11   :  { %s196_s19 = smov 128   ;;  %s197_s20 = smov 8  }
  0x12   :  { %25 = dma.hbm_to_vmem [thread:$0]  %s251_s0, 256, %s20_s10, [#allocation3], %s196_s19, %s196_s19, %s197_s20  }
  0x13   :  { %s198_s23 = smov [#allocation5]   ;;  %s145_s27 = scalar_lea.hbm %s252_s1, 256 }
  0x14   :  { %s35_s24 = sshll.u32 %s198_s23, 4  ;;  %p146_p8 = scmp.ne.s32.totalorder %s252_s1, %s145_s27  ;;  %s36_s24 = int_to_ptr.vmem [resolvable:$true] %s35_s24 }
  0x15   :  { %p149_p9 = scmp.lt.u32.totalorder %s145_s27, %s252_s1 }
  0x17   :  { %p151_p10 = pnand %p149_p9, %p146_p8 }
  0x19   :  { %154 = shalt.err (!%p151_p10)
}
  0x1a   :  { %s155_s4 = scalar_lea.vmem %s36_s24, 256  ;;  %p160_p12 = scmp.lt.s32.totalorder %s36_s24, %s36_s24 }
  0x1b   :  { %p156_p11 = scmp.ne.s32.totalorder %s36_s24, %s155_s4  ;;  %p161_p13 = scmp.lt.s32.totalorder %s155_s4, %s155_s4 }
  0x1d   :  { %p162_p0 = por %p161_p13, %p160_p12 }
  0x1f   :  { %p163_p1 = pnand %p162_p0, %p156_p11 }
  0x21   :  { %166 = shalt.err (!%p163_p1)
}
  0x22   :  { %41 = dma.hbm_to_vmem [thread:$0]  %s252_s1, 256, %s36_s24, [#allocation6], %s196_s19, %s196_s19, %s197_s20  }
  0x23   :  { %189 = dma.done.wait [#allocation3], 256  }
  0x24   :  { %190 = vsyncadd [#allocation3], 4294967040 }
  0x25   :  { %191 = dma.done.wait [#allocation6], 256  }
  0x26   :  { %192 = vsyncadd [#allocation6], 4294967040  ;;  %v57_v0 = vld [vmem:[#allocation2] sm:$0xff]  ;;  %v58_v1 = vld [vmem:[#allocation2 + $0x8] sm:$0xff]  ;;  %s199_s1 = smov [#allocation7]  }
  0x27   :  { %v61_v2 = vsub.f32 1.0, %v57_v0  ;;  %v62_v3 = vsub.f32 1.0, %v58_v1  ;;  %115 = vlog2.f32 %v57_v0  ;;  %v59_v6 = vld [vmem:[#allocation5] sm:$0xff]  ;;  %v60_v7 = vld [vmem:[#allocation5 + $0x8] sm:$0xff]  ;;  %v75_v10 = vmul.f32 %v57_v0, %v57_v0  ;;  %s99_s6 = sshll.u32 %s199_s1, 4  ;;  %s100_s6 = int_to_ptr.vmem [resolvable:$true] %s99_s6 }
  0x28   :  { %117 = vlog2.f32 %v58_v1  ;;  %v77_v11 = vsub.f32 1.0, %v59_v6  ;;  %v76_v12 = vmul.f32 %v58_v1, %v58_v1  ;;  %v78_v13 = vsub.f32 1.0, %v60_v7  ;;  %s167_s7 = scalar_lea.vmem %s100_s6, 128  ;;  %p172_p3 = scmp.lt.s32.totalorder %s100_s6, %s100_s6 }
  0x29   :  { %v63_v4 = vmul.f32 %v61_v2, %v61_v2  ;;  %v64_v5 = vmul.f32 %v62_v3, %v62_v3  ;;  %119 = vlog2.f32 %v61_v2  ;;  %p168_p2 = scmp.ne.s32.totalorder %s100_s6, %s167_s7  ;;  %p173_p4 = scmp.lt.s32.totalorder %s167_s7, %s167_s7 }
  0x2a   :  { %121 = vlog2.f32 %v62_v3  ;;  %v79_v19 = vmul.f32 %v77_v11, %v75_v10  ;;  %v80_v22 = vmul.f32 %v78_v13, %v76_v12 }
  0x2b   :  { %v65_v8 = vsub.f32 0.0, %v63_v4  ;;  %v66_v9 = vsub.f32 0.0, %v64_v5  ;;  %p174_p5 = por %p173_p4, %p172_p3 }
  0x2d   :  { %v67_v14 = vmul.f32 %v65_v8, %v59_v6  ;;  %v68_v16 = vmul.f32 %v66_v9, %v60_v7  ;;  %p175_p6 = pnand %p174_p5, %p168_p2 }
  0x31   :  { %v116_v15 = vpop.eup %115 }
  0x32   :  { %v118_v17 = vpop.eup %117  ;;  %v70_v18 = vmul.f32 0.6931472, %v116_v15 }
  0x33   :  { %v120_v20 = vpop.eup %119  ;;  %v72_v21 = vmul.f32 0.6931472, %v118_v17 }
  0x34   :  { %v122_v23 = vpop.eup %121  ;;  %v73_v24 = vmul.f32 %v70_v18, %v67_v14  ;;  %v82_v25 = vmul.f32 0.6931472, %v120_v20 }
  0x35   :  { %v74_v26 = vmul.f32 %v72_v21, %v68_v16  ;;  %v84_v27 = vmul.f32 0.6931472, %v122_v23 }
  0x36   :  { %v85_v28 = vmul.f32 %v82_v25, %v79_v19 }
  0x37   :  { %v86_v29 = vmul.f32 %v84_v27, %v80_v22 }
  0x38   :  { %v87_v30 = vsub.f32 %v73_v24, %v85_v28 }
  0x39   :  { %v88_v31 = vsub.f32 %v74_v26, %v86_v29 }
  0x3b   :  { %v90_v32 = vadd.f32 %v88_v31, %v87_v30 }
  0x3d   :  { %92 = vst [vmem:[#allocation7] sm:$0xff] %v90_v32 }
  0x3e   :  { %178 = shalt.err (!%p175_p6)
}
  0x3f   :  { %s179_s10 = scalar_lea.hbm %s253_s2, 128 }
  0x40   :  { %p180_p7 = scmp.ne.s32.totalorder %s253_s2, %s179_s10  ;;  %p183_p8 = scmp.lt.u32.totalorder %s179_s10, %s253_s2 }
  0x42   :  { %p185_p9 = pnand %p183_p8, %p180_p7 }
  0x44   :  { %188 = shalt.err (!%p185_p9)
}
  0x45   :  { %102 = dma.vmem_to_hbm [thread:$0]  %s100_s6, 128, %s253_s2, [#allocation4]  }
  0x46   :  { %193 = dma.done.wait [#allocation4], 128  }
  0x47   :  { %194 = vsyncadd [#allocation4], 4294967168 }
  0x48   :  { %106 = vsyncpa [#allocation3], 1 }
  0x49   :  { %107 = vsyncpa [#allocation6], 1 }
  0x4a   :  { %108 = vsyncpa [#allocation4], 1 }

</bundles_post_ra>
